<compile_context>
chip_gen: v6e
topology: v6e:2x2x1
jax: 0.10.0
libtpu: 0.0.40
codegen_flags: <defaults>
</compile_context>

<pallas_src>
import functools

import jax
import jax.numpy as jnp
from jax import lax
from jax.experimental import pallas as pl
from jax.experimental.pallas import tpu as pltpu


def _round_up(x, m):
    return (x + m - 1) // m * m


def _stack_shifted_taps(src, tmod, K, dilation, cstack):
    """Build the (cstack, T) im2col slab for a causal dilated conv.

    Row block k holds `src` shifted right by (K-1-k)*dilation along the lane
    (time) axis, zeroed where the shift reaches before the start of the
    length-L batch segment (the causal left pad).  Shifts use pltpu.roll (XLU)
    plus a mask (VPU) instead of lane-unaligned slices / padded copies.
    """
    C, T = src.shape
    slabs = []
    for k in range(K):
        off = (K - 1 - k) * dilation
        if off == 0:
            slabs.append(src)
        else:
            rolled = pltpu.roll(src, off, axis=1)          # rolled[:, t] = src[:, t-off]
            slabs.append(jnp.where(tmod >= off, rolled, 0.0))
    if cstack > K * C:                                     # contraction zero-pad
        slabs.append(jnp.zeros((cstack - K * C, T), src.dtype))
    return jnp.concatenate(slabs, axis=0)


def temporal_block_kernel(x_ref, w1_ref, b1_ref, w2_ref, b2_ref, wd_ref, bd_ref,
                          out_ref, *, K, dilation, L, has_downsample):
    T = x_ref.shape[1]
    x = x_ref[...]                                          # (C_in, T) f32
    # Column index within each length-L batch segment (tiles hold whole batches).
    tmod = lax.broadcasted_iota(jnp.int32, (1, T), 1) % L

    # ---- conv1: single fused MXU matmul over stacked taps, bias, ReLU ----
    xcat = _stack_shifted_taps(x, tmod, K, dilation, w1_ref.shape[1])
    h1 = jnp.dot(w1_ref[...], xcat.astype(jnp.bfloat16),
                 preferred_element_type=jnp.float32) + b1_ref[...]
    h1 = jnp.maximum(h1, 0.0)                               # dropout1: identity (eval)

    # ---- conv2 ----
    hcat = _stack_shifted_taps(h1, tmod, K, dilation, w2_ref.shape[1])
    h2 = jnp.dot(w2_ref[...], hcat.astype(jnp.bfloat16),
                 preferred_element_type=jnp.float32) + b2_ref[...]
    h2 = jnp.maximum(h2, 0.0)                               # dropout2: identity (eval)

    # ---- residual (1x1 downsample conv, or identity when C_in == C_out) ----
    if has_downsample:
        res = jnp.dot(wd_ref[...], x, preferred_element_type=jnp.float32) + bd_ref[...]
    else:
        res = x

    out_ref[...] = jnp.maximum(h2 + res, 0.0)               # lane-dense full store


def _pick_block_batch(B, L, C_in, C_out, K, vmem_budget_bytes=20 * 1024 * 1024):
    """Largest whole-batch lane tile (Bt*L multiple of 128) that fits a
    conservative VMEM budget (sized for v7x's smaller 64 MiB VMEM), keeping
    >= 2 grid steps for megacore when a reasonably wide alternative exists."""
    def est(bt):
        T = bt * L
        per_lane = 4 * (2 * C_in + 2 * C_out            # double-buffered in/out blocks
                        + 2 * K * C_in + 2 * K * C_out  # stacked im2col slabs (f32+bf16)
                        + 4 * C_out)                    # h1 / h2 / res temporaries
        return T * per_lane
    cands = [d for d in range(1, B + 1) if B % d == 0 and (d * L) % 128 == 0]
    if not cands:
        return B                                        # full-array block (always legal)
    fitting = [d for d in cands if est(d) <= vmem_budget_bytes] or [min(cands)]
    best = max(fitting)
    if B // best < 2:
        alt = [d for d in fitting if B // d >= 2 and d * L >= 256]
        if alt:
            best = max(alt)
    return best


def temporal_block(x, w1_stacked, b1, w2_stacked, b2, wd, bd, *,
                   kernel_size, dilation, has_downsample=True):
    """x: (B, C_in, L) f32.
    w1_stacked: (C_out, CS1) bf16, w2_stacked: (C_out, CS2) bf16 (tap-stacked,
    contraction zero-padded); b1/b2/bd: (C_out, 1) f32; wd: (C_out, C_in) f32.
    Returns (B, C_out, L) f32."""
    B, C_in, L = x.shape
    C_out = w1_stacked.shape[0]
    K = kernel_size

    # Fold batch into the lane axis (layout plumbing for lane-dense tiles).
    x2d = jnp.transpose(x, (1, 0, 2)).reshape(C_in, B * L)

    Bt = _pick_block_batch(B, L, C_in, C_out, K)
    T = Bt * L
    grid = (B // Bt,)
    # TODO(synk): for very long L with small B, add a time-tile grid axis that
    # carries a `padding`-wide h1 halo across tiles; the batch-aligned tiling
    # used here never splits a sequence, so no halo is needed.

    kern = functools.partial(temporal_block_kernel, K=K, dilation=dilation, L=L,
                             has_downsample=has_downsample)
    out2d = pl.pallas_call(
        kern,
        out_shape=jax.ShapeDtypeStruct((C_out, B * L), jnp.float32),
        grid=grid,
        in_specs=[
            pl.BlockSpec((C_in, T), lambda i: (0, i)),
            pl.BlockSpec(w1_stacked.shape, lambda i: (0, 0)),
            pl.BlockSpec((C_out, 1), lambda i: (0, 0)),
            pl.BlockSpec(w2_stacked.shape, lambda i: (0, 0)),
            pl.BlockSpec((C_out, 1), lambda i: (0, 0)),
            pl.BlockSpec((C_out, C_in), lambda i: (0, 0)),
            pl.BlockSpec((C_out, 1), lambda i: (0, 0)),
        ],
        out_specs=pl.BlockSpec((C_out, T), lambda i: (0, i)),
        compiler_params=pltpu.CompilerParams(
            dimension_semantics=("parallel",)),
    )(x2d, w1_stacked, b1, w2_stacked, b2, wd, bd)

    return jnp.transpose(out2d.reshape(C_out, B, L), (1, 0, 2))


# ----------------------- parameter construction (glue) -----------------------

def apply_weight_norm(v, g):
    # PyTorch weight_norm default dim=0: per-output-channel norm over (cin, k).
    norm = jnp.sqrt(jnp.sum(v * v, axis=(1, 2), keepdims=True))
    return g[:, None, None] * v / norm


def grouped_to_blockdiag(w, groups):
    # w: (C_out, C_in_per_group, K) grouped conv weight ->
    #    (K, C_out, C_in) block-diagonal per-tap dense matrices.
    C_out, cinpg, K = w.shape
    C_in = cinpg * groups
    coutpg = C_out // groups
    full = jnp.zeros((K, C_out, C_in), jnp.float32)
    for g in range(groups):
        blk = jnp.transpose(w[g * coutpg:(g + 1) * coutpg], (2, 0, 1))  # (K, coutpg, cinpg)
        full = full.at[:, g * coutpg:(g + 1) * coutpg,
                       g * cinpg:(g + 1) * cinpg].set(blk)
    return full


def stack_taps_for_mxu(w_taps, pad_to=16):
    # (K, C_out, C) per-tap weights -> (C_out, round_up(K*C, pad_to)) bf16,
    # tap k occupying contraction columns [k*C, (k+1)*C).
    K, C_out, C = w_taps.shape
    w = jnp.transpose(w_taps, (1, 0, 2)).reshape(C_out, K * C)
    cs = _round_up(K * C, pad_to)
    if cs > K * C:
        w = jnp.pad(w, ((0, 0), (0, cs - K * C)))
    return w.astype(jnp.bfloat16)


def reference_forward(x, w1_taps, b1, w2_taps, b2, wd, bd, *, dilation, has_downsample):
    # Pure-JAX reference mirroring the kernel numerics: bf16 matmul operands for
    # the convs, f32 accumulation, f32 residual / bias / ReLU.
    K = w1_taps.shape[0]
    pad = (K - 1) * dilation
    Lx = x.shape[-1]

    def conv(xin, Wt, b):
        xp = jnp.pad(xin, ((0, 0), (0, 0), (pad, 0))).astype(jnp.bfloat16)
        Wt = Wt.astype(jnp.bfloat16)
        o = jnp.zeros((xin.shape[0], Wt.shape[1], Lx), jnp.float32)
        for k in range(K):
            off = k * dilation
            o = o + jnp.einsum('oc,bct->bot', Wt[k], xp[:, :, off:off + Lx],
                               preferred_element_type=jnp.float32)
        return o + b[None]

    h1 = jnp.maximum(conv(x, w1_taps, b1), 0.0)
    h2 = jnp.maximum(conv(h1, w2_taps, b2), 0.0)
    if has_downsample:
        res = jnp.einsum('oc,bct->bot', wd, x,
                         preferred_element_type=jnp.float32) + bd[None]
    else:
        res = x
    return jnp.maximum(h2 + res, 0.0)


if __name__ == "__main__":
    # Module config (stride must be 1 for the causal-TCN formulation; standard
    # TCN usage: padding = (kernel_size - 1) * dilation, which Chomp1d removes).
    B, n_inputs, n_outputs, L = 4, 8, 16, 128
    kernel_size, stride, dilation = 3, 1, 2
    padding = (kernel_size - 1) * dilation
    groups = 4
    assert stride == 1
    assert padding == (kernel_size - 1) * dilation

    key = jax.random.PRNGKey(0)
    ks = jax.random.split(key, 9)

    # conv1: weight_norm(v, g), grouped weight v: (C_out, C_in/groups, K)
    v1 = 0.01 * jax.random.normal(ks[0], (n_outputs, n_inputs // groups, kernel_size), jnp.float32)
    g1 = 0.5 + jax.random.uniform(ks[1], (n_outputs,), jnp.float32)
    bias1 = 0.1 * jax.random.normal(ks[2], (n_outputs,), jnp.float32)

    # conv2
    v2 = 0.01 * jax.random.normal(ks[3], (n_outputs, n_outputs // groups, kernel_size), jnp.float32)
    g2 = 0.5 + jax.random.uniform(ks[4], (n_outputs,), jnp.float32)
    bias2 = 0.1 * jax.random.normal(ks[5], (n_outputs,), jnp.float32)

    # downsample 1x1 conv (present because n_inputs != n_outputs)
    has_downsample = n_inputs != n_outputs
    if has_downsample:
        wd = 0.01 * jax.random.normal(ks[6], (n_outputs, n_inputs), jnp.float32)
        bd = 0.1 * jax.random.normal(ks[7], (n_outputs,), jnp.float32)
    else:
        wd = jnp.eye(n_outputs, dtype=jnp.float32)
        bd = jnp.zeros((n_outputs,), jnp.float32)

    # Effective (weight-normed, block-diagonal) per-tap weights + MXU-stacked form.
    w1_taps = grouped_to_blockdiag(apply_weight_norm(v1, g1), groups)   # (K, C_out, C_in)
    w2_taps = grouped_to_blockdiag(apply_weight_norm(v2, g2), groups)   # (K, C_out, C_out)
    w1_stacked = stack_taps_for_mxu(w1_taps)                            # (C_out, 32) bf16
    w2_stacked = stack_taps_for_mxu(w2_taps)                            # (C_out, 48) bf16
    b1_col, b2_col, bd_col = bias1[:, None], bias2[:, None], bd[:, None]

    x = jax.random.normal(ks[8], (B, n_inputs, L), jnp.float32)

    out = temporal_block(x, w1_stacked, b1_col, w2_stacked, b2_col, wd, bd_col,
                         kernel_size=kernel_size, dilation=dilation,
                         has_downsample=has_downsample)
    out = jax.block_until_ready(out)

    ref = reference_forward(x, w1_taps, b1_col, w2_taps, b2_col, wd, bd_col,
                            dilation=dilation, has_downsample=has_downsample)
    assert out.shape == (B, n_outputs, L)
    max_err = float(jnp.max(jnp.abs(out - ref)))
    assert jnp.allclose(out, ref, atol=1e-4, rtol=1e-4), max_err

    print("KERNEL_OK")
</pallas_src>

<mosaic_0001>
module attributes {stable_mosaic.version = 11 : i64} {
  func.func @temporal_block_kernel(%arg0: i32, %arg1: memref<8x256xf32, #tpu.memory_space<vmem>>, %arg2: memref<16x32xbf16, #tpu.memory_space<vmem>>, %arg3: memref<16x1xf32, #tpu.memory_space<vmem>>, %arg4: memref<16x48xbf16, #tpu.memory_space<vmem>>, %arg5: memref<16x1xf32, #tpu.memory_space<vmem>>, %arg6: memref<16x8xf32, #tpu.memory_space<vmem>>, %arg7: memref<16x1xf32, #tpu.memory_space<vmem>>, %arg8: memref<16x256xf32, #tpu.memory_space<vmem>>) attributes {dimension_semantics = [#tpu.dimension_semantics<parallel>], iteration_bounds = array<i64: 2>, scalar_prefetch = 0 : i64, scratch_operands = 0 : i64, tpu.core_type = #tpu.core_type<tc>, window_params = [{transform_indices = @transform_0, window_bounds = array<i64: 8, 256>}, {pipeline_mode = #tpu.pipeline_mode<synchronous>, transform_indices = @transform_1, window_bounds = array<i64: 16, 32>}, {pipeline_mode = #tpu.pipeline_mode<synchronous>, transform_indices = @transform_2, window_bounds = array<i64: 16, 1>}, {pipeline_mode = #tpu.pipeline_mode<synchronous>, transform_indices = @transform_3, window_bounds = array<i64: 16, 48>}, {pipeline_mode = #tpu.pipeline_mode<synchronous>, transform_indices = @transform_4, window_bounds = array<i64: 16, 1>}, {pipeline_mode = #tpu.pipeline_mode<synchronous>, transform_indices = @transform_5, window_bounds = array<i64: 16, 8>}, {pipeline_mode = #tpu.pipeline_mode<synchronous>, transform_indices = @transform_6, window_bounds = array<i64: 16, 1>}, {transform_indices = @transform_7, window_bounds = array<i64: 16, 256>}]} {
    %c0 = arith.constant 0 : index
    %c0_0 = arith.constant 0 : index
    %0 = vector.load %arg1[%c0, %c0_0] : memref<8x256xf32, #tpu.memory_space<vmem>>, vector<8x256xf32>
    %1 = tpu.iota {dimensions = array<i32: 1>} : vector<1x256xi32>
    %c128_i32 = arith.constant 128 : i32
    %c0_i32 = arith.constant 0 : i32
    %2 = arith.cmpi eq, %c128_i32, %c0_i32 : i32
    %c1_i32 = arith.constant 1 : i32
    %3 = arith.select %2, %c1_i32, %c128_i32 : i32
    %4 = vector.broadcast %3 : i32 to vector<1x256xi32>
    %5 = arith.remsi %1, %4 : vector<1x256xi32>
    %c0_i32_1 = arith.constant 0 : i32
    %6 = vector.broadcast %c0_i32_1 : i32 to vector<1x256xi32>
    %7 = arith.cmpi ne, %5, %6 : vector<1x256xi32>
    %c0_i32_2 = arith.constant 0 : i32
    %8 = vector.broadcast %c0_i32_2 : i32 to vector<1x256xi32>
    %9 = arith.cmpi slt, %5, %8 : vector<1x256xi32>
    %c0_i32_3 = arith.constant 0 : i32
    %10 = arith.cmpi slt, %3, %c0_i32_3 : i32
    %11 = vector.broadcast %10 : i1 to vector<1x256xi1>
    %12 = vector.broadcast %11 : vector<1x256xi1> to vector<1x256xi1>
    %13 = arith.xori %9, %12 : vector<1x256xi1>
    %14 = arith.andi %13, %7 : vector<1x256xi1>
    %15 = vector.broadcast %3 : i32 to vector<1x256xi32>
    %16 = arith.addi %5, %15 : vector<1x256xi32>
    %17 = arith.select %14, %16, %5 : vector<1x256xi1>, vector<1x256xi32>
    %c4_i32 = arith.constant 4 : i32
    %18 = tpu.dynamic_rotate %0 by %c4_i32 dim 1 : vector<8x256xf32>, i32 -> vector<8x256xf32>
    %c4_i32_4 = arith.constant 4 : i32
    %19 = vector.broadcast %c4_i32_4 : i32 to vector<1x256xi32>
    %20 = arith.cmpi sge, %17, %19 : vector<1x256xi32>
    %cst = arith.constant 0.000000e+00 : f32
    %21 = vector.shape_cast %20 : vector<1x256xi1> to vector<1x256xi1>
    %22 = vector.broadcast %21 : vector<1x256xi1> to vector<8x256xi1>
    %23 = vector.broadcast %cst : f32 to vector<8x256xf32>
    %24 = arith.select %22, %18, %23 : vector<8x256xi1>, vector<8x256xf32>
    %c2_i32 = arith.constant 2 : i32
    %25 = tpu.dynamic_rotate %0 by %c2_i32 dim 1 : vector<8x256xf32>, i32 -> vector<8x256xf32>
    %c2_i32_5 = arith.constant 2 : i32
    %26 = vector.broadcast %c2_i32_5 : i32 to vector<1x256xi32>
    %27 = arith.cmpi sge, %17, %26 : vector<1x256xi32>
    %cst_6 = arith.constant 0.000000e+00 : f32
    %28 = vector.shape_cast %27 : vector<1x256xi1> to vector<1x256xi1>
    %29 = vector.broadcast %28 : vector<1x256xi1> to vector<8x256xi1>
    %30 = vector.broadcast %cst_6 : f32 to vector<8x256xf32>
    %31 = arith.select %29, %25, %30 : vector<8x256xi1>, vector<8x256xf32>
    %cst_7 = arith.constant 0.000000e+00 : f32
    %32 = vector.broadcast %cst_7 : f32 to vector<8x256xf32>
    %33 = tpu.concatenate %24, %31, %0, %32 in 0 : vector<8x256xf32>, vector<8x256xf32>, vector<8x256xf32>, vector<8x256xf32> -> vector<32x256xf32>
    %c0_8 = arith.constant 0 : index
    %c0_9 = arith.constant 0 : index
    %34 = vector.load %arg2[%c0_8, %c0_9] : memref<16x32xbf16, #tpu.memory_space<vmem>>, vector<16x32xbf16>
    %35 = arith.truncf %33 : vector<32x256xf32> to vector<32x256xbf16>
    %cst_10 = arith.constant dense<0.000000e+00> : vector<16x256xf32>
    %36 = tpu.matmul %34, %35, %cst_10 {dimension_numbers = #tpu.dot_dimension_numbers<[1], [0], [0], [1], [0, 0, 1, 1], [], []>} : vector<16x32xbf16>, vector<32x256xbf16>, vector<16x256xf32> -> vector<16x256xf32>
    %c0_11 = arith.constant 0 : index
    %c0_12 = arith.constant 0 : index
    %37 = vector.load %arg3[%c0_11, %c0_12] : memref<16x1xf32, #tpu.memory_space<vmem>>, vector<16x1xf32>
    %38 = vector.broadcast %37 : vector<16x1xf32> to vector<16x256xf32>
    %39 = arith.addf %36, %38 : vector<16x256xf32>
    %cst_13 = arith.constant 0.000000e+00 : f32
    %40 = vector.broadcast %cst_13 : f32 to vector<16x256xf32>
    %41 = arith.maximumf %39, %40 : vector<16x256xf32>
    %c4_i32_14 = arith.constant 4 : i32
    %42 = tpu.dynamic_rotate %41 by %c4_i32_14 dim 1 : vector<16x256xf32>, i32 -> vector<16x256xf32>
    %c4_i32_15 = arith.constant 4 : i32
    %43 = vector.broadcast %c4_i32_15 : i32 to vector<1x256xi32>
    %44 = arith.cmpi sge, %17, %43 : vector<1x256xi32>
    %cst_16 = arith.constant 0.000000e+00 : f32
    %45 = vector.shape_cast %44 : vector<1x256xi1> to vector<1x256xi1>
    %46 = vector.broadcast %45 : vector<1x256xi1> to vector<16x256xi1>
    %47 = vector.broadcast %cst_16 : f32 to vector<16x256xf32>
    %48 = arith.select %46, %42, %47 : vector<16x256xi1>, vector<16x256xf32>
    %c2_i32_17 = arith.constant 2 : i32
    %49 = tpu.dynamic_rotate %41 by %c2_i32_17 dim 1 : vector<16x256xf32>, i32 -> vector<16x256xf32>
    %c2_i32_18 = arith.constant 2 : i32
    %50 = vector.broadcast %c2_i32_18 : i32 to vector<1x256xi32>
    %51 = arith.cmpi sge, %17, %50 : vector<1x256xi32>
    %cst_19 = arith.constant 0.000000e+00 : f32
    %52 = vector.shape_cast %51 : vector<1x256xi1> to vector<1x256xi1>
    %53 = vector.broadcast %52 : vector<1x256xi1> to vector<16x256xi1>
    %54 = vector.broadcast %cst_19 : f32 to vector<16x256xf32>
    %55 = arith.select %53, %49, %54 : vector<16x256xi1>, vector<16x256xf32>
    %56 = tpu.concatenate %48, %55, %41 in 0 : vector<16x256xf32>, vector<16x256xf32>, vector<16x256xf32> -> vector<48x256xf32>
    %c0_20 = arith.constant 0 : index
    %c0_21 = arith.constant 0 : index
    %57 = vector.load %arg4[%c0_20, %c0_21] : memref<16x48xbf16, #tpu.memory_space<vmem>>, vector<16x48xbf16>
    %58 = arith.truncf %56 : vector<48x256xf32> to vector<48x256xbf16>
    %cst_22 = arith.constant dense<0.000000e+00> : vector<16x256xf32>
    %59 = tpu.matmul %57, %58, %cst_22 {dimension_numbers = #tpu.dot_dimension_numbers<[1], [0], [0], [1], [0, 0, 1, 1], [], []>} : vector<16x48xbf16>, vector<48x256xbf16>, vector<16x256xf32> -> vector<16x256xf32>
    %c0_23 = arith.constant 0 : index
    %c0_24 = arith.constant 0 : index
    %60 = vector.load %arg5[%c0_23, %c0_24] : memref<16x1xf32, #tpu.memory_space<vmem>>, vector<16x1xf32>
    %61 = vector.broadcast %60 : vector<16x1xf32> to vector<16x256xf32>
    %62 = arith.addf %59, %61 : vector<16x256xf32>
    %cst_25 = arith.constant 0.000000e+00 : f32
    %63 = vector.broadcast %cst_25 : f32 to vector<16x256xf32>
    %64 = arith.maximumf %62, %63 : vector<16x256xf32>
    %c0_26 = arith.constant 0 : index
    %c0_27 = arith.constant 0 : index
    %65 = vector.load %arg6[%c0_26, %c0_27] : memref<16x8xf32, #tpu.memory_space<vmem>>, vector<16x8xf32>
    %cst_28 = arith.constant dense<0.000000e+00> : vector<16x256xf32>
    %66 = tpu.matmul %65, %0, %cst_28 {dimension_numbers = #tpu.dot_dimension_numbers<[1], [0], [0], [1], [0, 0, 1, 1], [], []>} : vector<16x8xf32>, vector<8x256xf32>, vector<16x256xf32> -> vector<16x256xf32>
    %c0_29 = arith.constant 0 : index
    %c0_30 = arith.constant 0 : index
    %67 = vector.load %arg7[%c0_29, %c0_30] : memref<16x1xf32, #tpu.memory_space<vmem>>, vector<16x1xf32>
    %68 = vector.broadcast %67 : vector<16x1xf32> to vector<16x256xf32>
    %69 = arith.addf %66, %68 : vector<16x256xf32>
    %70 = arith.addf %64, %69 : vector<16x256xf32>
    %cst_31 = arith.constant 0.000000e+00 : f32
    %71 = vector.broadcast %cst_31 : f32 to vector<16x256xf32>
    %72 = arith.maximumf %70, %71 : vector<16x256xf32>
    %c0_32 = arith.constant 0 : index
    %c0_33 = arith.constant 0 : index
    %73 = vector.load %arg8[%c0_32, %c0_33] : memref<16x256xf32, #tpu.memory_space<vmem>>, vector<16x256xf32>
    tpu.vector_store %arg8[%c0_32, %c0_33], %72 {strides = array<i32>} : memref<16x256xf32, #tpu.memory_space<vmem>>, vector<16x256xf32>,
    return
  }
  func.func @transform_0(%arg0: i32) -> (i32, i32) {
    %c0_i32 = arith.constant 0 : i32
    %c0_i32_0 = arith.constant 0 : i32
    return %c0_i32, %arg0 : i32, i32
  }
  func.func @transform_1(%arg0: i32) -> (i32, i32) {
    %c0_i32 = arith.constant 0 : i32
    %c0_i32_0 = arith.constant 0 : i32
    %c0_i32_1 = arith.constant 0 : i32
    return %c0_i32, %c0_i32_0 : i32, i32
  }
  func.func @transform_2(%arg0: i32) -> (i32, i32) {
    %c0_i32 = arith.constant 0 : i32
    %c0_i32_0 = arith.constant 0 : i32
    %c0_i32_1 = arith.constant 0 : i32
    return %c0_i32, %c0_i32_0 : i32, i32
  }
  func.func @transform_3(%arg0: i32) -> (i32, i32) {
    %c0_i32 = arith.constant 0 : i32
    %c0_i32_0 = arith.constant 0 : i32
    %c0_i32_1 = arith.constant 0 : i32
    return %c0_i32, %c0_i32_0 : i32, i32
  }
  func.func @transform_4(%arg0: i32) -> (i32, i32) {
    %c0_i32 = arith.constant 0 : i32
    %c0_i32_0 = arith.constant 0 : i32
    %c0_i32_1 = arith.constant 0 : i32
    return %c0_i32, %c0_i32_0 : i32, i32
  }
  func.func @transform_5(%arg0: i32) -> (i32, i32) {
    %c0_i32 = arith.constant 0 : i32
    %c0_i32_0 = arith.constant 0 : i32
    %c0_i32_1 = arith.constant 0 : i32
    return %c0_i32, %c0_i32_0 : i32, i32
  }
  func.func @transform_6(%arg0: i32) -> (i32, i32) {
    %c0_i32 = arith.constant 0 : i32
    %c0_i32_0 = arith.constant 0 : i32
    %c0_i32_1 = arith.constant 0 : i32
    return %c0_i32, %c0_i32_0 : i32, i32
  }
  func.func @transform_7(%arg0: i32) -> (i32, i32) {
    %c0_i32 = arith.constant 0 : i32
    %c0_i32_0 = arith.constant 0 : i32
    return %c0_i32, %arg0 : i32, i32
  }
}

</mosaic_0001>

<bundles_post_ra>
// kernel: tpu_custom_call.1
= control target key start
LH: loop header
LB: loop body
LE: loop exit
PB: predicated region body
PF: predicated region fallthrough
CT: control target
= control target key end

     0   :  { %12 = vsyncpa [#allocation3], 0  ;;  %s1137_s0 = inlined_call_operand.vmem [shape: f32[8,512], index: 0, kind: input, shape index: {}]   ;;  %s1138_s1 = inlined_call_operand.vmem [shape: bf16[16,32], index: 1, kind: input, shape index: {}]   ;;  %s1139_s2 = inlined_call_operand.vmem [shape: f32[16,1], index: 2, kind: input, shape index: {}]   ;;  %s1140_s3 = inlined_call_operand.vmem [shape: bf16[16,48], index: 3, kind: input, shape index: {}]   ;;  %s1141_s4 = inlined_call_operand.vmem [shape: f32[16,1], index: 4, kind: input, shape index: {}]   ;;  %s1142_s5 = inlined_call_operand.vmem [shape: f32[16,8], index: 5, kind: input, shape index: {}]   ;;  %s1143_s6 = inlined_call_operand.vmem [shape: f32[16,1], index: 6, kind: input, shape index: {}]   ;;  %s1144_s7 = inlined_call_operand.hbm [shape: f32[16,512], index: 7, kind: output, shape index: {}]  }
   0x1   :  { %14 = vsyncpa [#allocation3 + $0x1], 0  ;;  %s935_s24 = smov 0   ;;  %s937_s25 = smov 0  }
   0x2   :  { %s939_s26 = smov 0   ;;  %s941_s27 = smov 0  }
   0x3 LB: > { %s956_s28 = sadd.s32 4294967295, %s885_s27   ;;  %s708_s29 = sadd.s32 4294967294, %s885_s27   ;;  %s885_s27 = sphi %s941_s27, %s1154_s27   ;;  %s881_s26 = sphi %s939_s26, %s1153_s26   ;;  %s877_s25 = sphi %s937_s25, %s1152_s25   ;;  %s873_s24 = sphi %s935_s24, %s1151_s24  }
   0x4   : > { %s960_s30 = sadd.s32 1, %s885_s27   ;;  %s179_s8 = sadd.s32 1, %s881_s26 }
   0x5   : > { %s176_s9 = ssub.s32 %s885_s27, %s960_s30  ;;  %p189_p0 = scmp.ne.s32.totalorder %s881_s26, %s877_s25 }
   0x6   : > { %p177_p1 = scmp.eq.s32.totalorder %s176_s9, 0  ;;  %p190_p2 = scmp.eq.s32.totalorder %s956_s28, 1 }
   0x7   : > { %p195_p3 = scmp.ne.s32.totalorder %s877_s25, %s873_s24  ;;  %p196_p4 = scmp.eq.s32.totalorder %s708_s29, 1 }
   0x8   : > { %s971_s10 = scalar_select %p177_p1, %s881_s26, %s179_s8  }
   0x9   : > { %p973_p5 = por %p190_p2, %p189_p0  ;;  %p977_p6 = por %p196_p4, %p195_p3 }
   0xa   : > { %p711_p7 = scmp.ge.s32.totalorder %s885_s27, 1  ;;  %p241_p8 = scmp.lt.s32.totalorder %s885_s27, 3 }
   0xc   : > { %p242_p9 = pnand %p711_p7, %p241_p8 }
   0xd   : > { %s713_s13 = sshll.u32 (!%p242_p9), %s956_s28, 1  ;;  %s889_s18 = smov (!%p242_p9), 4  }
   0xe   : > { %245 = sbr.rel (%p242_p9) target bundleno = 708 (0x2c4), region = 48  ;;  %p274_p10 = scmp.lt.s32.totalorder (!%p242_p9), %s713_s13, 3 }
   0xf   : > { %s890_s23 = smov (!%p242_p9), 2   ;;  %s270_s9 = sand.u32 (!%p242_p9), 1, %s877_s25  }
  0x10   : > { %s744_s16 = sshll.u32 (!%p242_p9), %s956_s28, 8  ;;  %s1097_s21 = scalar_lea.sflag (!%p242_p9), [#allocation3], %s270_s9 }
  0x11   : > { %s1093_s20 = scalar_lea.hbm (!%p242_p9), %s1144_s7, %s744_s16  ;;  %s891_s22 = smov (!%p242_p9), [#allocation2]  }
  0x13   : > { %s1156_s13 = smov (!%p274_p10, %s713_s13), 3  ;;  %v887_v3 = vmov 0.0   ;;  %v888_v6 = vmov 0   ;;  %v346_v7 = vld [vmem:[%s1139_s2] sm:$0xff]  ;;  %v347_v8 = vld [vmem:[%s1139_s2 + $0x8] sm:$0xff]  ;;  %v283_v9 = vlaneseq  ;;  %vm363_vm8 = vcmask 261120  }
  0x14   : > { %s714_s14 = sshll.u32 %s1156_s13, 3  ;;  %399 = vmatprep.mubr.bf16.mxu0 %v888_v6  ;;  %801 = vset.pattern.permute.xlu1 %v888_v6  ;;  %v823_v27 = vld [vmem:[%s1138_s1] sm:$0xff]   ;;  %vm536_vm9 = vcmask 64512   ;;  %v523_v47 = vld [vmem:[%s1142_s5 + $0x8] sm:$0xff]  ;;  %vm471_vm14 = vcmask 392192   ;;  %s712_s13 = sshll.u32 %s270_s9, 5 }
  0x15   : > { %s277_s17 = scalar_lea.vmem %s1137_s0, %s714_s14  ;;  %507 = vmatprep.mubr.bf16.mxu1 %v888_v6  ;;  %350 = vperm.xlu1 %801, %v346_v7   ;;  %v995_v10 = vand.u32 127, %v283_v9  ;;  %v522_v28 = vld [vmem:[%s1142_s5] sm:$0xff]  ;;  %v455_v48 = vld [vmem:[%s1141_s4 + $0x8] sm:$0xff]  ;;  %s272_s14 = scalar_lea.vmem [#allocation2], %s712_s13 }
  0x16   : > { %v281_v0 = vld [vmem:[%s277_s17] sm:$0xff]  ;;  %v282_v1 = vld [vmem:[%s277_s17 + $0x8] sm:$0xff]  ;;  %822 = vset.pattern.permute.xlu0 %v888_v6  ;;  %s646_s15 = sshll.u32 %s272_s14, 4  ;;  %s1088_s15 = int_to_ptr.vmem [resolvable:$true] %s646_s15 }
  0x17   : > { %v791_v2 = vpack.i.bf16 %v282_v1, %v281_v0  ;;  %v345_v4 = vpack.c.bf16 %v887_v3, %v282_v1  ;;  %v344_v5 = vpack.c.bf16 %v887_v3, %v281_v0  ;;  %v285_v11 = vadd.s32 128, %v995_v10  ;;  %v454_v49 = vld [vmem:[%s1141_s4] sm:$0xff]  ;;  %v525_v51 = vld [vmem:[%s1143_s6 + $0x8] sm:$0xff]  ;;  %s825_s28 = scalar_lea.vmem %s1088_s15, 512 }
  0x18   : > { %vm314_vm0 = vcmp.lt.s32.totalorder %v995_v10, 4  ;;  %vm329_vm1 = vcmp.lt.s32.totalorder %v995_v10, 2  ;;  %vm317_vm4 = vcmp.ge.s32.totalorder %v995_v10, 4  ;;  %vm332_vm5 = vcmp.ge.s32.totalorder %v995_v10, 2  ;;  %v524_v50 = vld [vmem:[%s1143_s6] sm:$0xff]  ;;  %p826_p11 = scmp.ne.s32.totalorder %s1088_s15, %s825_s28 }
  0x19   : > { %792 = vrot.lane.b32.xlu0 %v791_v2, %s889_s18  ;;  %379 = vmatprep.subr.bf16.mxu0 %v345_v4  ;;  %v297_v13 = vand.u32 127, %v285_v11  ;;  %vm719_vm7 = vmpackc.low %vm332_vm5, %vm317_vm4 }
  0x1a   : > { %380 = vmatpush1.bf16.msra.mxu0 %v344_v5  ;;  %355 = vperm.xlu1 %801, %v347_v8   ;;  %vm727_vm11 = vmpackc.low %vm332_vm5, %vm332_vm5  ;;  %p827_p12 = pnand %p826_p11, %p973_p5 }
  0x1b   : > { %vm1000_vm2 = vcmp.ge.s32.totalorder %v297_v13, 4  ;;  %vm1004_vm3 = vcmp.ge.s32.totalorder %v297_v13, 2  ;;  %vm733_vm13 = vmpackc.low %vm317_vm4, %vm317_vm4  ;;  %v824_v13 = vld [vmem:[%s1140_s3] sm:$0xff]  }
  0x1c   : > { %vm716_vm6 = vmpackc.low %vm1004_vm3, %vm1000_vm2  ;;  %p828_p13 = pneg %p827_p12 }
  0x1d   : > { %797 = vrot.lane.b32.xlu0 %v791_v2, %s890_s23  ;;  %vm724_vm10 = vmpackc.low %vm1004_vm3, %vm1004_vm3 }
  0x1e   : > { %vm730_vm12 = vmpackc.low %vm1000_vm2, %vm1000_vm2 }
  0x8b   : > { %v793_v12 = vpop.permute.xlu0 %792 }
  0x8c   : > { %v795_v14 = vunpack.i.h.bf16 %v793_v12  ;;  %v794_v15 = vunpack.i.l.bf16 %v793_v12 }
  0x8e   : > { %v315_v21 = vsel %vm314_vm0, %v794_v15, %v795_v14  ;;  %v316_v22 = vsel %vm314_vm0, %v795_v14, %v794_v15 }
  0x8f   : > { %v798_v16 = vpop.permute.xlu0 %797 }
  0x90   : > { %v800_v19 = vunpack.i.h.bf16 %v798_v16  ;;  %v799_v20 = vunpack.i.l.bf16 %v798_v16  ;;  %v351_v29 = vpop.permute.xlu1 %350 }
  0x92   : > { %v330_v23 = vsel %vm329_vm1, %v799_v20, %v800_v19  ;;  %v331_v24 = vsel %vm329_vm1, %v800_v19, %v799_v20 }
  0x93   : > { %v717_v25 = vpack.c.bf16 %v330_v23, %v315_v21  ;;  %v720_v26 = vpack.c.bf16 %v331_v24, %v316_v22 }
  0x95   : > { %718 = vmatprep.subr.msk.bf16.mxu0 %vm716_vm6, %v717_v25  ;;  %v356_v33 = vpop.permute.xlu1 %355 }
  0x96   : > { %721 = vmatpush1.bf16.msk.msra.mxu0 %vm719_vm7, %v720_v26 }
  0x97   : > { %573 = vmatprep.subr.mxu0 %v282_v1 }
  0x99   : > { %722 = vmatmul.mubr.msk.bf16.vlgmr.msra.gmra.mxu0 %vm363_vm8, %v823_v27 }
  0x9a   : > { %574 = vmatpush1.msra.mxu0 %v281_v0  ;;  %607 = vmatprep.mubr.f32.mxu0 %v887_v3 }
  0xa1   : > { %737 = vmatmul.mubr.msk.f32.vlgmr.msra.gmra.mxu0 %vm536_vm9, %v522_v28 }
  0xa2   : > { %613 = vmatprep.mubr.f32.mxu0 %v887_v3 }
  0xa5   : > { %738 = vmatmul.mubr.msk.f32.gmra.mxu0 %vm536_vm9, %v523_v47 }
 0x159   : > { %v401_v30 = vpop.f32.mrf.mxu0 }
 0x15a   : > { %v402_v32 = vadd.f32 %v401_v30, %v351_v29 }
 0x15b   : > { %v403_v31 = vpop.f32.mrf.mxu0 }
 0x15c   : > { %v404_v35 = vadd.f32 %v403_v31, %v351_v29  ;;  %v410_v38 = vmax.f32 %v402_v32, 0.0 }
 0x15d   : > { %v405_v34 = vpop.f32.mrf.mxu0 }
 0x15e   : > { %v406_v36 = vadd.f32 %v405_v34, %v356_v33  ;;  %v411_v41 = vmax.f32 %v404_v35, 0.0 }
 0x15f   : > { %v407_v37 = vpop.f32.mrf.mxu0 }
 0x160   : > { %v412_v39 = vmax.f32 %v406_v36, 0.0  ;;  %v408_v40 = vadd.f32 %v407_v37, %v356_v33 }
 0x161   : > { %v609_v15 = vpop.f32.mrf.mxu0 }
 0x162   : > { %v413_v42 = vmax.f32 %v408_v40, 0.0  ;;  %v802_v43 = vpack.i.bf16 %v412_v39, %v410_v38  ;;  %v452_v46 = vpack.c.bf16 %v412_v39, %v410_v38 }
 0x163   : > { %v611_v17 = vpop.f32.mrf.mxu0 }
 0x164   : > { %803 = vrot.lane.b32.xlu0 %v802_v43, %s890_s23  ;;  %v812_v44 = vpack.i.bf16 %v413_v42, %v411_v41  ;;  %v453_v45 = vpack.c.bf16 %v413_v42, %v411_v41 }
 0x165   : > { %v615_v21 = vpop.f32.mrf.mxu0 }
 0x166   : > { %813 = vrot.lane.b32.xlu1 %v812_v44, %s890_s23  ;;  %485 = vmatprep.subr.bf16.mxu1 %v453_v45  ;;  %s829_s23 = sshll.u32 %s891_s22, 4  ;;  %s830_s23 = int_to_ptr.vmem [resolvable:$false] %s829_s23 }
 0x167   : > { %486 = vmatpush1.bf16.msra.mxu1 %v452_v46  ;;  %v617_v31 = vpop.f32.mrf.mxu0  ;;  %s831_s29 = scalar_lea.vmem %s830_s23, 1024  ;;  %p832_p0 = scmp.lt.s32.totalorder %s1088_s15, %s830_s23 }
 0x168   : > { %808 = vrot.lane.b32.xlu0 %v802_v43, %s889_s18  ;;  %p833_p1 = scmp.lt.s32.totalorder %s831_s29, %s825_s28 }
 0x16a   : > { %818 = vrot.lane.b32.xlu1 %v812_v44, %s889_s18  ;;  %p834_p2 = por %p833_p1, %p832_p0 }
 0x16c   : > { %458 = vperm.xlu0 %822, %v454_v49   ;;  %p835_p3 = pnand %p834_p2, %p828_p13 }
 0x16e   : > { %463 = vperm.xlu1 %801, %v455_v48  }
 0x170   : > { %533 = vperm.xlu0 %822, %v525_v51  }
 0x172   : > { %528 = vperm.xlu1 %801, %v524_v50  }
 0x1d6   : > { %v804_v52 = vpop.permute.xlu0 %803 }
 0x1d7   : > { %v806_v54 = vunpack.i.h.bf16 %v804_v52  ;;  %v805_v55 = vunpack.i.l.bf16 %v804_v52 }
 0x1d8   : > { %v814_v53 = vpop.permute.xlu1 %813 }
 0x1d9   : > { %v816_v56 = vunpack.i.h.bf16 %v814_v53  ;;  %v815_v57 = vunpack.i.l.bf16 %v814_v53 }
 0x1da   : > { %v809_v58 = vpop.permute.xlu0 %808 }
 0x1db   : > { %v438_v59 = vsel %vm329_vm1, %v805_v55, %v815_v57  ;;  %v439_v60 = vsel %vm329_vm1, %v806_v54, %v816_v56  ;;  %v440_v61 = vsel %vm329_vm1, %v815_v57, %v805_v55  ;;  %v441_v62 = vsel %vm329_vm1, %v816_v56, %v806_v54 }
 0x1dc   : > { %v725_v63 = vpack.c.bf16 %v439_v60, %v438_v59  ;;  %v728_v0 = vpack.c.bf16 %v441_v62, %v440_v61  ;;  %v819_v1 = vpop.permute.xlu1 %818  ;;  %v811_v2 = vunpack.i.h.bf16 %v809_v58  ;;  %v810_v3 = vunpack.i.l.bf16 %v809_v58 }
 0x1dd   : > { %v821_v4 = vunpack.i.h.bf16 %v819_v1  ;;  %v820_v5 = vunpack.i.l.bf16 %v819_v1 }
 0x1de   : > { %726 = vmatprep.subr.msk.bf16.mxu1 %vm724_vm10, %v725_v63 }
 0x1df   : > { %v422_v6 = vsel %vm314_vm0, %v810_v3, %v820_v5  ;;  %v423_v7 = vsel %vm314_vm0, %v811_v2, %v821_v4  ;;  %v424_v8 = vsel %vm314_vm0, %v820_v5, %v810_v3  ;;  %v425_v9 = vsel %vm314_vm0, %v821_v4, %v811_v2  ;;  %729 = vmatpush1.bf16.msk.msra.mxu1 %vm727_vm11, %v728_v0 }
 0x1e0   : > { %v731_v11 = vpack.c.bf16 %v423_v7, %v422_v6  ;;  %v734_v12 = vpack.c.bf16 %v425_v9, %v424_v8 }
 0x1e2   : > { %732 = vmatprep.subr.msk.bf16.mxu1 %vm730_vm12, %v731_v11 }
 0x1e3   : > { %735 = vmatpush1.bf16.msk.msra.mxu1 %vm733_vm13, %v734_v12 }
 0x1e6   : > { %736 = vmatmul.mubr.msk.bf16.vlgmr.msra.gmra.mxu1 %vm471_vm14, %v824_v13 }
 0x1e7   : > { %v459_v16 = vpop.permute.xlu0 %458 }
 0x1e9   : > { %v464_v14 = vpop.permute.xlu1 %463 }
 0x1eb   : > { %v534_v25 = vpop.permute.xlu0 %533 }
 0x1ec   : > { %v616_v32 = vadd.f32 %v615_v21, %v534_v25  ;;  %v618_v39 = vadd.f32 %v617_v31, %v534_v25 }
 0x1ed   : > { %v529_v18 = vpop.permute.xlu1 %528 }
 0x1ee   : > { %v610_v22 = vadd.f32 %v609_v15, %v529_v18  ;;  %v612_v27 = vadd.f32 %v611_v17, %v529_v18 }
 0x2a6   : > { %v509_v19 = vpop.f32.mrf.mxu1 }
 0x2a7   : > { %v510_v20 = vadd.f32 %v509_v19, %v459_v16 }
 0x2a8   : > { %v511_v10 = vpop.f32.mrf.mxu1 }
 0x2a9   : > { %v518_v23 = vmax.f32 %v510_v20, 0.0  ;;  %v512_v24 = vadd.f32 %v511_v10, %v459_v16 }
 0x2aa   : > { %v513_v26 = vpop.f32.mrf.mxu1 }
 0x2ab   : > { %v620_v28 = vadd.f32 %v610_v22, %v518_v23  ;;  %v519_v29 = vmax.f32 %v512_v24, 0.0  ;;  %v514_v30 = vadd.f32 %v513_v26, %v464_v14 }
 0x2ac   : > { %v515_v33 = vpop.f32.mrf.mxu1 }
 0x2ad   : > { %v624_v34 = vmax.f32 %v620_v28, 0.0  ;;  %v621_v35 = vadd.f32 %v612_v27, %v519_v29  ;;  %v520_v36 = vmax.f32 %v514_v30, 0.0  ;;  %v516_v37 = vadd.f32 %v515_v33, %v464_v14 }
 0x2af   : > { %628 = vst [vmem:[%s272_s14] sm:$0xff] %v624_v34  ;;  %v625_v38 = vmax.f32 %v621_v35, 0.0  ;;  %v622_v40 = vadd.f32 %v616_v32, %v520_v36  ;;  %v521_v41 = vmax.f32 %v516_v37, 0.0 }
 0x2b1   : > { %629 = vst [vmem:[%s272_s14 + $0x8] sm:$0xff] %v625_v38  ;;  %v626_v42 = vmax.f32 %v622_v40, 0.0  ;;  %v623_v43 = vadd.f32 %v618_v39, %v521_v41 }
 0x2b3   : > { %630 = vst [vmem:[%s272_s14 + $0x10] sm:$0xff] %v626_v42  ;;  %v627_v44 = vmax.f32 %v623_v43, 0.0 }
 0x2b5   : > { %631 = vst [vmem:[%s272_s14 + $0x18] sm:$0xff] %v627_v44 }
 0x2b6   : > { %838 = shalt.err (!%p835_p3)
}
 0x2b7   : > { %s839_s18 = scalar_lea.hbm %s1093_s20, 512  ;;  %s843_s13 = scalar_lea.hbm %s1144_s7, 1024 }
 0x2b8   : > { %p840_p4 = scmp.ne.s32.totalorder %s1093_s20, %s839_s18  ;;  %p844_p9 = scmp.lt.s32.totalorder %s1093_s20, %s1144_s7 }
 0x2b9   : > { %p845_p10 = scmp.lt.s32.totalorder %s843_s13, %s839_s18 }
 0x2ba   : > { %p841_p7 = pnand %p840_p4, %p973_p5 }
 0x2bb   : > { %p846_p11 = por %p845_p10, %p844_p9 }
 0x2bc   : > { %p842_p8 = pneg %p841_p7 }
 0x2be   : > { %p847_p12 = pnand %p846_p11, %p842_p8 }
 0x2c0   : > { %850 = shalt.err (!%p847_p12)
}
 0x2c1   : > { %s892_s17 = smov 256   ;;  %s893_s19 = smov 512  }
 0x2c2   : > { %s894_s28 = smov 16  }
 0x2c3   : > { %745 = dma.vmem_to_hbm [thread:$0]  (%p973_p5), %s1088_s15, 512, %s1093_s20, %s1097_s21, %s892_s17, %s893_s19, %s894_s28  }
 0x2c4 PF: > { %p751_p13 = scmp.ge.s32.totalorder %s885_s27, 2  ;;  %s661_s22 = sand.u32 1, %s873_s24  }
 0x2c5   : > { %s662_s23 = scalar_lea.sflag [#allocation3], %s661_s22 }
 0x2c6   : > { %p748_p0 = pnand %p751_p13, %p977_p6 }
 0x2c8   : > { %p749_p1 = pneg %p748_p0 }
 0x2ca   : > { %868 = dma.done.wait (%p749_p1), %s662_s23, 512  }
 0x2cb   : > { %870 = vsyncadd (%p749_p1), %s662_s23, 4294966784  ;;  %p17_p2 = scmp.ge.s32.totalorder %s960_s30, 4   ;;  %s1151_s24 = smov %s877_s25 }
 0x2cc   : > { %s1152_s25 = smov %s881_s26  ;;  %s1153_s26 = smov %s971_s10 }
 0x2cd   : > { %s1154_s27 = smov %s960_s30  ;;  %19 = sbr.rel (!%p17_p2) target bundleno = 3 (0x3), region = 83 }
 0x2d2   :  { %667 = vsyncpa [#allocation3], 1 }
 0x2d3   :  { %669 = vsyncpa [#allocation3 + $0x1], 1 }

</bundles_post_ra>
